<compile_context>
chip_gen: v7x
topology: tpu7x:2x2x1
jax: 0.10.0
libtpu: 0.0.40
codegen_flags: <defaults>
</compile_context>

<pallas_src>
import jax
import jax.numpy as jnp
import numpy as np
from jax.experimental import pallas as pl
from jax.experimental.pallas import tpu as pltpu


def decoder_atten_kernel(xcat_ref, h_ref, enc_ref, wbig_ref, wca_ref, wih_ref, bias_ref,
                         hout_ref):
    f32, bf16 = jnp.float32, jnp.bfloat16
    Fp = h_ref.shape[1]
    Lp = enc_ref.shape[1]

    bias = bias_ref[...]                 # (8, >=Fp) f32, one VMEM tile
    ba   = bias[0:1, :Lp]                # attention bias
    bc   = bias[1:2, :Fp]                # attn_combine bias
    b_r  = bias[2:3, :Fp]                # r-gate bias (b_ir + b_hr)
    b_z  = bias[3:4, :Fp]                # z-gate bias (b_iz + b_hz)
    b_in = bias[4:5, :Fp]                # n-gate input-side bias
    b_hn = bias[5:6, :Fp]                # n-gate hidden-side bias

    h = h_ref[...]                       # (Bp, Fp) f32 -- gating path stays f32

    # Fused dot: [z | h] @ [Wcz | Whh_r | Whh_z | Whh_n | Wa]  (bf16 in, f32 acc)
    big = jnp.dot(xcat_ref[...], wbig_ref[...], preferred_element_type=f32)
    cz   = big[:, 0 * Fp:1 * Fp]         # z-side attn_combine term
    gh_r = big[:, 1 * Fp:2 * Fp]         # h-side GRU r term
    gh_z = big[:, 2 * Fp:3 * Fp]         # h-side GRU z term
    gh_n = big[:, 3 * Fp:4 * Fp]         # h-side GRU n term
    alog = big[:, 4 * Fp:4 * Fp + Lp]    # attention logits (lane-aligned start)

    # attn_weights = tanh(attn(cat(z, h)));  atten_applied = bmm(aw, encoder_outputs)
    aw = jnp.tanh(alog + ba)                                     # (Bp, Lp) f32
    # L is tiny -> VPU broadcast-mul + sublane reduce (f32 throughout).
    atten = jnp.sum(aw[:, :, None] * enc_ref[...], axis=1)       # (Bp, Fp) f32

    # output = relu(attn_combine(cat(z, atten)))  -- z half already in cz.
    x = cz + jnp.dot(atten.astype(bf16), wca_ref[...], preferred_element_type=f32) + bc
    x = jnp.maximum(x, 0.0).astype(bf16)                         # GRU input

    # Single-step GRU (PyTorch gate order r, z, n); one fused input-side dot.
    gi = jnp.dot(x, wih_ref[...], preferred_element_type=f32)    # (Bp, 3*Fp)
    r  = jax.nn.sigmoid(gi[:, 0 * Fp:1 * Fp] + gh_r + b_r)
    zg = jax.nn.sigmoid(gi[:, 1 * Fp:2 * Fp] + gh_z + b_z)
    n  = jnp.tanh(gi[:, 2 * Fp:3 * Fp] + b_in + r * (gh_n + b_hn))

    hout_ref[...] = (1.0 - zg) * n + zg * h                      # (Bp, Fp) f32


def _round_up(x, m):
    return ((x + m - 1) // m) * m


def prepare_params(params, F, L):
    """One-time weight repacking (transpose / pad / fuse / bf16 cast).
    Call once; reuse the result for every decode step."""
    f32, bf16 = jnp.float32, jnp.bfloat16
    Fp = _round_up(F, 128)
    Cp = _round_up(2 * F, 128)
    Lpad = _round_up(L, 128)

    # Fused big-dot RHS: columns [Wcz | Whh_r | Whh_z | Whh_n | Wa]; rows [z rows | h rows].
    wbig = jnp.zeros((Cp, 4 * Fp + Lpad), f32)
    wc = params["comb_w"].T                                          # (2F, F)
    wbig = wbig.at[0:F, 0:F].set(wc[:F])                             # z-side combine
    whh = params["gru_w_hh"]                                         # (3F, F), gates r,z,n
    for g in range(3):
        wbig = wbig.at[F:2 * F, (g + 1) * Fp:(g + 1) * Fp + F].set(
            whh[g * F:(g + 1) * F].T)
    wbig = wbig.at[0:2 * F, 4 * Fp:4 * Fp + L].set(params["attn_w"].T)
    wbig = wbig.astype(bf16)

    # atten-side attn_combine weight.
    wca = jnp.zeros((Fp, Fp), f32).at[0:F, 0:F].set(wc[F:]).astype(bf16)

    # Fused GRU input-side weight [W_ir.T | W_iz.T | W_in.T].
    wih = params["gru_w_ih"]                                         # (3F, F)
    wih_all = jnp.zeros((Fp, 3 * Fp), f32)
    for g in range(3):
        wih_all = wih_all.at[0:F, g * Fp:g * Fp + F].set(wih[g * F:(g + 1) * F].T)
    wih_all = wih_all.astype(bf16)

    # All biases packed into a single (8, >=Fp) f32 tile (rows: ba, bc, b_r, b_z, b_in, b_hn).
    bih, bhh = params["gru_b_ih"], params["gru_b_hh"]
    BW = max(Fp, _round_up(L, 128))
    bias = jnp.zeros((8, BW), f32)
    bias = bias.at[0, :L].set(params["attn_b"])
    bias = bias.at[1, :F].set(params["comb_b"])
    bias = bias.at[2, :F].set(bih[0:F] + bhh[0:F])
    bias = bias.at[3, :F].set(bih[F:2 * F] + bhh[F:2 * F])
    bias = bias.at[4, :F].set(bih[2 * F:3 * F])
    bias = bias.at[5, :F].set(bhh[2 * F:3 * F])

    return {"wbig": wbig, "wca": wca, "wih_all": wih_all, "bias": bias}


def decoder_atten(z, hidden, encoder_outputs, prepped):
    """One decoder step. z: (B,1,F), hidden: (1,B,F), encoder_outputs: (B,L,F)."""
    B, _, F = z.shape
    L = encoder_outputs.shape[1]
    f32, bf16 = jnp.float32, jnp.bfloat16

    Bp = _round_up(B, 8)          # sublane-dense batch
    Fp = _round_up(F, 128)        # lane-dense feature axis
    Cp = _round_up(2 * F, 128)    # padded width of concat([z, h])
    Lp = _round_up(L, 8)

    z2d = z[:, 0, :].astype(f32)
    h0 = hidden[0].astype(f32)

    xcat = jnp.pad(jnp.concatenate([z2d, h0], axis=1),
                   ((0, Bp - B), (0, Cp - 2 * F))).astype(bf16)            # (Bp, Cp) bf16
    hp = jnp.pad(h0, ((0, Bp - B), (0, Fp - F)))                           # (Bp, Fp) f32
    encp = jnp.pad(encoder_outputs.astype(f32),
                   ((0, Bp - B), (0, Lp - L), (0, Fp - F)))                # (Bp, Lp, Fp) f32

    inputs = (xcat, hp, encp, prepped["wbig"], prepped["wca"],
              prepped["wih_all"], prepped["bias"])

    h_new_p = pl.pallas_call(
        decoder_atten_kernel,
        out_shape=jax.ShapeDtypeStruct((Bp, Fp), jnp.float32),
        in_specs=[pl.BlockSpec(memory_space=pltpu.MemorySpace.VMEM) for _ in inputs],
        out_specs=pl.BlockSpec(memory_space=pltpu.MemorySpace.VMEM),
        input_output_aliases={1: 0},       # hidden state updated in place
    )(*inputs)

    h_new = h_new_p[:B, :F]
    output = h_new[:, None, :]     # (B, 1, F)  GRU output (seq len 1, batch_first)
    hn = h_new[None, :, :]         # (1, B, F)  new hidden state
    return output, hn


def make_params(key, F, L):
    ks = jax.random.split(key, 8)
    s = 0.1
    return {
        "attn_w":   (jax.random.normal(ks[0], (L, 2 * F)) * s).astype(jnp.float32),
        "attn_b":   (jax.random.normal(ks[1], (L,)) * s).astype(jnp.float32),
        "comb_w":   (jax.random.normal(ks[2], (F, 2 * F)) * s).astype(jnp.float32),
        "comb_b":   (jax.random.normal(ks[3], (F,)) * s).astype(jnp.float32),
        "gru_w_ih": (jax.random.normal(ks[4], (3 * F, F)) * s).astype(jnp.float32),
        "gru_w_hh": (jax.random.normal(ks[5], (3 * F, F)) * s).astype(jnp.float32),
        "gru_b_ih": (jax.random.normal(ks[6], (3 * F,)) * s).astype(jnp.float32),
        "gru_b_hh": (jax.random.normal(ks[7], (3 * F,)) * s).astype(jnp.float32),
    }


def ref_forward(z, hidden, enc, p):
    """Pure-JAX f32 reference matching the PyTorch forward exactly."""
    F = z.shape[-1]
    zc = z[:, 0, :]
    h0 = hidden[0]
    aw = jnp.tanh(jnp.concatenate([zc, h0], 1) @ p["attn_w"].T + p["attn_b"])
    atten = jnp.einsum("bl,blf->bf", aw, enc)
    x = jnp.concatenate([zc, atten], 1) @ p["comb_w"].T + p["comb_b"]
    x = jax.nn.relu(x)
    gi = x @ p["gru_w_ih"].T + p["gru_b_ih"]
    gh = h0 @ p["gru_w_hh"].T + p["gru_b_hh"]
    r = jax.nn.sigmoid(gi[:, 0:F] + gh[:, 0:F])
    zg = jax.nn.sigmoid(gi[:, F:2 * F] + gh[:, F:2 * F])
    n = jnp.tanh(gi[:, 2 * F:3 * F] + r * gh[:, 2 * F:3 * F])
    h_new = (1.0 - zg) * n + zg * h0
    return h_new[:, None, :], h_new[None, :, :]


if __name__ == "__main__":
    B, F, L = 2, 32, 8          # batch, num_features, input_len_seq

    key = jax.random.PRNGKey(0)
    kp, kz, kh, ke = jax.random.split(key, 4)
    params = make_params(kp, F, L)
    prepped = prepare_params(params, F, L)   # one-time weight repacking (hoisted out of the step)

    z = jax.random.normal(kz, (B, 1, F), dtype=jnp.float32)
    hidden = jax.random.normal(kh, (1, B, F), dtype=jnp.float32)
    encoder_outputs = jax.random.normal(ke, (B, L, F), dtype=jnp.float32)

    fwd = jax.jit(decoder_atten)
    out, hn = fwd(z, hidden, encoder_outputs, prepped)
    out = jax.block_until_ready(out)
    hn = jax.block_until_ready(hn)

    out_ref, hn_ref = ref_forward(z, hidden, encoder_outputs, params)
    # Tolerance covers bf16 MXU operands (f32 accumulation, f32 biases/gating).
    assert np.allclose(np.asarray(out), np.asarray(out_ref), rtol=3e-2, atol=3e-2)
    assert np.allclose(np.asarray(hn), np.asarray(hn_ref), rtol=3e-2, atol=3e-2)

    # NOTE: self.dropout and self.sigmoid are defined in __init__ but never used in forward.
    print("KERNEL_OK")
</pallas_src>

<mosaic_0001>
module attributes {stable_mosaic.version = 11 : i64} {
  func.func @decoder_atten_kernel(%arg0: memref<8x128xbf16, #tpu.memory_space<vmem>>, %arg1: memref<8x128xf32, #tpu.memory_space<vmem>>, %arg2: memref<8x8x128xf32, #tpu.memory_space<vmem>>, %arg3: memref<128x640xbf16, #tpu.memory_space<vmem>>, %arg4: memref<128x128xbf16, #tpu.memory_space<vmem>>, %arg5: memref<128x384xbf16, #tpu.memory_space<vmem>>, %arg6: memref<8x128xf32, #tpu.memory_space<vmem>>, %arg7: memref<8x128xf32, #tpu.memory_space<vmem>>) attributes {dimension_semantics = [], scalar_prefetch = 0 : i64, scratch_operands = 0 : i64, tpu.core_type = #tpu.core_type<tc>} {
    %c0 = arith.constant 0 : index
    %c0_0 = arith.constant 0 : index
    %0 = vector.load %arg6[%c0, %c0_0] : memref<8x128xf32, #tpu.memory_space<vmem>>, vector<8x128xf32>
    %1 = vector.extract_strided_slice %0 {offsets = [0, 0], sizes = [1, 8], strides = [1, 1]} : vector<8x128xf32> to vector<1x8xf32>
    %2 = vector.extract_strided_slice %0 {offsets = [1, 0], sizes = [1, 128], strides = [1, 1]} : vector<8x128xf32> to vector<1x128xf32>
    %3 = vector.extract_strided_slice %0 {offsets = [2, 0], sizes = [1, 128], strides = [1, 1]} : vector<8x128xf32> to vector<1x128xf32>
    %4 = vector.extract_strided_slice %0 {offsets = [3, 0], sizes = [1, 128], strides = [1, 1]} : vector<8x128xf32> to vector<1x128xf32>
    %5 = vector.extract_strided_slice %0 {offsets = [4, 0], sizes = [1, 128], strides = [1, 1]} : vector<8x128xf32> to vector<1x128xf32>
    %6 = vector.extract_strided_slice %0 {offsets = [5, 0], sizes = [1, 128], strides = [1, 1]} : vector<8x128xf32> to vector<1x128xf32>
    %c0_1 = arith.constant 0 : index
    %c0_2 = arith.constant 0 : index
    %7 = vector.load %arg1[%c0_1, %c0_2] : memref<8x128xf32, #tpu.memory_space<vmem>>, vector<8x128xf32>
    %c0_3 = arith.constant 0 : index
    %c0_4 = arith.constant 0 : index
    %8 = vector.load %arg0[%c0_3, %c0_4] : memref<8x128xbf16, #tpu.memory_space<vmem>>, vector<8x128xbf16>
    %c0_5 = arith.constant 0 : index
    %c0_6 = arith.constant 0 : index
    %9 = vector.load %arg3[%c0_5, %c0_6] : memref<128x640xbf16, #tpu.memory_space<vmem>>, vector<128x640xbf16>
    %cst = arith.constant dense<0.000000e+00> : vector<8x640xf32>
    %10 = tpu.matmul %8, %9, %cst {dimension_numbers = #tpu.dot_dimension_numbers<[1], [0], [0], [1], [0, 0, 1, 1], [], []>} : vector<8x128xbf16>, vector<128x640xbf16>, vector<8x640xf32> -> vector<8x640xf32>
    %11 = vector.extract_strided_slice %10 {offsets = [0, 0], sizes = [8, 128], strides = [1, 1]} : vector<8x640xf32> to vector<8x128xf32>
    %12 = vector.extract_strided_slice %10 {offsets = [0, 128], sizes = [8, 128], strides = [1, 1]} : vector<8x640xf32> to vector<8x128xf32>
    %13 = vector.extract_strided_slice %10 {offsets = [0, 256], sizes = [8, 128], strides = [1, 1]} : vector<8x640xf32> to vector<8x128xf32>
    %14 = vector.extract_strided_slice %10 {offsets = [0, 384], sizes = [8, 128], strides = [1, 1]} : vector<8x640xf32> to vector<8x128xf32>
    %15 = vector.extract_strided_slice %10 {offsets = [0, 512], sizes = [8, 8], strides = [1, 1]} : vector<8x640xf32> to vector<8x8xf32>
    %16 = vector.broadcast %1 : vector<1x8xf32> to vector<8x8xf32>
    %17 = arith.addf %15, %16 : vector<8x8xf32>
    %18 = math.tanh %17 : vector<8x8xf32>
    %19 = vector.shape_cast %18 : vector<8x8xf32> to vector<8x8x1xf32>
    %c0_7 = arith.constant 0 : index
    %c0_8 = arith.constant 0 : index
    %c0_9 = arith.constant 0 : index
    %20 = vector.load %arg2[%c0_7, %c0_8, %c0_9] : memref<8x8x128xf32, #tpu.memory_space<vmem>>, vector<8x8x128xf32>
    %21 = vector.broadcast %19 : vector<8x8x1xf32> to vector<8x8x128xf32>
    %22 = arith.mulf %21, %20 : vector<8x8x128xf32>
    %cst_10 = arith.constant dense<0.000000e+00> : vector<8x128xf32>
    %23 = vector.multi_reduction <add>, %22, %cst_10 [1] : vector<8x8x128xf32> to vector<8x128xf32>
    %24 = arith.truncf %23 : vector<8x128xf32> to vector<8x128xbf16>
    %c0_11 = arith.constant 0 : index
    %c0_12 = arith.constant 0 : index
    %25 = vector.load %arg4[%c0_11, %c0_12] : memref<128x128xbf16, #tpu.memory_space<vmem>>, vector<128x128xbf16>
    %cst_13 = arith.constant dense<0.000000e+00> : vector<8x128xf32>
    %26 = tpu.matmul %24, %25, %cst_13 {dimension_numbers = #tpu.dot_dimension_numbers<[1], [0], [0], [1], [0, 0, 1, 1], [], []>} : vector<8x128xbf16>, vector<128x128xbf16>, vector<8x128xf32> -> vector<8x128xf32>
    %27 = arith.addf %11, %26 : vector<8x128xf32>
    %28 = vector.broadcast %2 : vector<1x128xf32> to vector<8x128xf32>
    %29 = arith.addf %27, %28 : vector<8x128xf32>
    %cst_14 = arith.constant 0.000000e+00 : f32
    %30 = vector.broadcast %cst_14 : f32 to vector<8x128xf32>
    %31 = arith.maximumf %29, %30 : vector<8x128xf32>
    %32 = arith.truncf %31 : vector<8x128xf32> to vector<8x128xbf16>
    %c0_15 = arith.constant 0 : index
    %c0_16 = arith.constant 0 : index
    %33 = vector.load %arg5[%c0_15, %c0_16] : memref<128x384xbf16, #tpu.memory_space<vmem>>, vector<128x384xbf16>
    %cst_17 = arith.constant dense<0.000000e+00> : vector<8x384xf32>
    %34 = tpu.matmul %32, %33, %cst_17 {dimension_numbers = #tpu.dot_dimension_numbers<[1], [0], [0], [1], [0, 0, 1, 1], [], []>} : vector<8x128xbf16>, vector<128x384xbf16>, vector<8x384xf32> -> vector<8x384xf32>
    %35 = vector.extract_strided_slice %34 {offsets = [0, 0], sizes = [8, 128], strides = [1, 1]} : vector<8x384xf32> to vector<8x128xf32>
    %36 = arith.addf %35, %12 : vector<8x128xf32>
    %37 = vector.broadcast %3 : vector<1x128xf32> to vector<8x128xf32>
    %38 = arith.addf %36, %37 : vector<8x128xf32>
    %39 = arith.negf %38 : vector<8x128xf32>
    %40 = math.exp %39 : vector<8x128xf32>
    %cst_18 = arith.constant 1.000000e+00 : f32
    %41 = vector.broadcast %cst_18 : f32 to vector<8x128xf32>
    %42 = arith.addf %41, %40 : vector<8x128xf32>
    %43 = arith.divf %41, %42 : vector<8x128xf32>
    %44 = vector.extract_strided_slice %34 {offsets = [0, 128], sizes = [8, 128], strides = [1, 1]} : vector<8x384xf32> to vector<8x128xf32>
    %45 = arith.addf %44, %13 : vector<8x128xf32>
    %46 = vector.broadcast %4 : vector<1x128xf32> to vector<8x128xf32>
    %47 = arith.addf %45, %46 : vector<8x128xf32>
    %48 = arith.negf %47 : vector<8x128xf32>
    %49 = math.exp %48 : vector<8x128xf32>
    %cst_19 = arith.constant 1.000000e+00 : f32
    %50 = vector.broadcast %cst_19 : f32 to vector<8x128xf32>
    %51 = arith.addf %50, %49 : vector<8x128xf32>
    %52 = arith.divf %50, %51 : vector<8x128xf32>
    %53 = vector.extract_strided_slice %34 {offsets = [0, 256], sizes = [8, 128], strides = [1, 1]} : vector<8x384xf32> to vector<8x128xf32>
    %54 = vector.broadcast %5 : vector<1x128xf32> to vector<8x128xf32>
    %55 = arith.addf %53, %54 : vector<8x128xf32>
    %56 = vector.broadcast %6 : vector<1x128xf32> to vector<8x128xf32>
    %57 = arith.addf %14, %56 : vector<8x128xf32>
    %58 = arith.mulf %43, %57 : vector<8x128xf32>
    %59 = arith.addf %55, %58 : vector<8x128xf32>
    %60 = math.tanh %59 : vector<8x128xf32>
    %cst_20 = arith.constant 1.000000e+00 : f32
    %61 = vector.broadcast %cst_20 : f32 to vector<8x128xf32>
    %62 = arith.subf %61, %52 : vector<8x128xf32>
    %63 = arith.mulf %62, %60 : vector<8x128xf32>
    %64 = arith.mulf %52, %7 : vector<8x128xf32>
    %65 = arith.addf %63, %64 : vector<8x128xf32>
    %c0_21 = arith.constant 0 : index
    %c0_22 = arith.constant 0 : index
    %66 = vector.load %arg7[%c0_21, %c0_22] : memref<8x128xf32, #tpu.memory_space<vmem>>, vector<8x128xf32>
    tpu.vector_store %arg7[%c0_21, %c0_22], %65 {strides = array<i32>} : memref<8x128xf32, #tpu.memory_space<vmem>>, vector<8x128xf32>,
    return
  }
}

</mosaic_0001>

<bundles_post_ra>
// kernel: decoder_atten.1
= control target key start
LH: loop header
LB: loop body
LE: loop exit
PB: predicated region body
PF: predicated region fallthrough
CT: control target
= control target key end

     0   :  { %12 = vsyncpa [#allocation3], 0  ;;  %s1551_s0 = inlined_call_operand.vmem [shape: bf16[8,128], index: 0, kind: input, shape index: {}]   ;;  %s1552_s1 = inlined_call_operand.vmem [shape: f32[8,128], index: 1, kind: input, shape index: {}, may-alias: {1,7}]   ;;  %s1553_s2 = inlined_call_operand.vmem [shape: f32[8,8,128], index: 2, kind: input, shape index: {}]   ;;  %s1554_s3 = inlined_call_operand.hbm [shape: bf16[128,640], index: 3, kind: input, shape index: {}]   ;;  %s1555_s4 = inlined_call_operand.vmem [shape: bf16[128,128], index: 4, kind: input, shape index: {}]   ;;  %s1556_s5 = inlined_call_operand.hbm [shape: bf16[128,384], index: 5, kind: input, shape index: {}]   ;;  %s1557_s6 = inlined_call_operand.vmem [shape: f32[8,128], index: 6, kind: input, shape index: {}]   ;;  %s1558_s7 = inlined_call_operand.vmem [shape: f32[8,128], index: 7, kind: output, shape index: {}, may-alias: {1,7}]  }
   0x1   :  { %13 = vsyncpa [#allocation5], 0  ;;  %s1329_s24 = smov [#allocation2]   ;;  %s1281_s28 = scalar_lea.hbm %s1554_s3, 5120 }
   0x2   :  { %s25_s25 = sshll.u32 %s1329_s24, 4  ;;  %p1282_p0 = scmp.ne.s32.totalorder %s1554_s3, %s1281_s28  ;;  %s26_s25 = int_to_ptr.vmem [resolvable:$true] %s25_s25 }
   0x3   :  { %p1285_p1 = scmp.lt.u32.totalorder %s1281_s28, %s1554_s3 }
   0x5   :  { %p1287_p2 = pnand %p1285_p1, %p1282_p0 }
   0x7   :  { %1290 = shalt.err (!%p1287_p2)
}
   0x8   :  { %s1291_s10 = scalar_lea.vmem %s26_s25, 5120  ;;  %p1296_p4 = scmp.lt.s32.totalorder %s26_s25, %s26_s25 }
   0x9   :  { %p1292_p3 = scmp.ne.s32.totalorder %s26_s25, %s1291_s10  ;;  %p1297_p5 = scmp.lt.s32.totalorder %s1291_s10, %s1291_s10 }
   0xb   :  { %p1298_p6 = por %p1297_p5, %p1296_p4 }
   0xd   :  { %p1299_p7 = pnand %p1298_p6, %p1292_p3 }
   0xf   :  { %1302 = shalt.err (!%p1299_p7)
}
  0x10   :  { %s1330_s11 = smov 320   ;;  %s1331_s12 = smov 20  }
  0x11   :  { %31 = dma.hbm_to_vmem [thread:$0]  %s1554_s3, 5120, %s26_s25, [#allocation3], %s1330_s11, %s1330_s11, %s1331_s12  }
  0x12   :  { %s1332_s15 = smov [#allocation4]   ;;  %s1303_s19 = scalar_lea.hbm %s1556_s5, 3072 }
  0x13   :  { %s39_s16 = sshll.u32 %s1332_s15, 4  ;;  %p1304_p8 = scmp.ne.s32.totalorder %s1556_s5, %s1303_s19  ;;  %s40_s16 = int_to_ptr.vmem [resolvable:$true] %s39_s16 }
  0x14   :  { %p1307_p9 = scmp.lt.u32.totalorder %s1303_s19, %s1556_s5 }
  0x16   :  { %p1309_p10 = pnand %p1307_p9, %p1304_p8 }
  0x18   :  { %1312 = shalt.err (!%p1309_p10)
}
  0x19   :  { %s1313_s24 = scalar_lea.vmem %s40_s16, 3072  ;;  %p1318_p12 = scmp.lt.s32.totalorder %s40_s16, %s40_s16 }
  0x1a   :  { %p1314_p11 = scmp.ne.s32.totalorder %s40_s16, %s1313_s24  ;;  %p1319_p13 = scmp.lt.s32.totalorder %s1313_s24, %s1313_s24 }
  0x1c   :  { %p1320_p0 = por %p1319_p13, %p1318_p12 }
  0x1e   :  { %p1321_p1 = pnand %p1320_p0, %p1314_p11 }
  0x20   :  { %1324 = shalt.err (!%p1321_p1)
}
  0x21   :  { %s1333_s3 = smov 192   ;;  %s1334_s25 = smov 12  }
  0x22   :  { %45 = dma.hbm_to_vmem [thread:$0]  %s1556_s5, 3072, %s40_s16, [#allocation5], %s1333_s3, %s1333_s3, %s1334_s25  }
  0x23   :  { %1325 = dma.done.wait [#allocation3], 5120  }
  0x24   :  { %1326 = vsyncadd [#allocation3], 4294962176 }
  0x25   :  { %1327 = dma.done.wait [#allocation5], 3072  }
  0x26   :  { %1328 = vsyncadd [#allocation5], 4294964224  ;;  %v1335_v0 = vmov 0   ;;  %v1173_v1 = vld [vmem:[#allocation2 + $0x4] ss:$20 sps:$4 sm:$0xff]   ;;  %v1336_v19 = vmov 0.0   ;;  %v436_v47 = vlaneseq }
  0x27   :  { %346 = vmatprep.mubr.bf16.mxu0 %v1335_v0  ;;  %387 = vmatprep.mubr.bf16.mxu1 %v1335_v0  ;;  %v1175_v2 = vld [vmem:[#allocation2] ss:$20 sps:$4 sm:$0xff]   ;;  %v1178_v4 = vld [vmem:[#allocation2 + $0x28] ss:$20 sps:$4 sm:$0xff]   ;;  %v1181_v6 = vld [vmem:[#allocation2 + $0x50] ss:$20 sps:$4 sm:$0xff]  }
  0x28   :  { %314 = vmatprep.subr.bf16.mxu0 %v1173_v1  ;;  %v1176_v3 = vld [vmem:[#allocation2 + $0x2c] ss:$20 sps:$4 sm:$0xff]   ;;  %v1179_v5 = vld [vmem:[#allocation2 + $0x54] ss:$20 sps:$4 sm:$0xff]   ;;  %v1182_v7 = vld [vmem:[#allocation2 + $0x7c] ss:$20 sps:$4 sm:$0xff]  }
  0x29   :  { %315 = vmatpush1.bf16.msra.mxu0 %v1175_v2  ;;  %v1184_v8 = vld [vmem:[#allocation2 + $0x78] ss:$20 sps:$4 sm:$0xff]   ;;  %v1187_v10 = vld [vmem:[#allocation2 + $0xa0] ss:$20 sps:$4 sm:$0xff]   ;;  %v1190_v12 = vld [vmem:[#allocation2 + $0xc8] ss:$20 sps:$4 sm:$0xff]  }
  0x2a   :  { %316 = vmatprep.subr.bf16.mxu0 %v1176_v3  ;;  %v1185_v9 = vld [vmem:[#allocation2 + $0xa4] ss:$20 sps:$4 sm:$0xff]   ;;  %v1188_v11 = vld [vmem:[#allocation2 + $0xcc] ss:$20 sps:$4 sm:$0xff]   ;;  %v1191_v13 = vld [vmem:[#allocation2 + $0xf4] ss:$20 sps:$4 sm:$0xff]  }
  0x2b   :  { %v1193_v14 = vld [vmem:[#allocation2 + $0xf0] ss:$20 sps:$4 sm:$0xff]   ;;  %v1196_v16 = vld [vmem:[#allocation2 + $0x118] ss:$20 sps:$4 sm:$0xff]   ;;  %v1407_v17 = vld [vmem:[%s1551_s0] sm:$0xf] }
  0x2c   :  { %v1194_v15 = vld [vmem:[#allocation2 + $0x11c] ss:$20 sps:$4 sm:$0xff]   ;;  %v1198_v20 = vld [vmem:[#allocation2 + $0x38] ss:$20 sps:$4 sm:$0xff]   ;;  %vm1337_vm0 = vmmov 0   ;;  %v1430_v48 = vshrl.u32 %v436_v47, 7 }
  0x2d   :  { %317 = vmatpush1.bf16.msra.mxu0 %v1178_v4  ;;  %v1197_v18 = vld [vmem:[#allocation2 + $0x10] ss:$20 sps:$4 sm:$0xff]   ;;  %v1199_v21 = vld [vmem:[#allocation2 + $0x60] ss:$20 sps:$4 sm:$0xff]   ;;  %v1200_v22 = vld [vmem:[#allocation2 + $0x88] ss:$20 sps:$4 sm:$0xff]  }
  0x2e   :  { %318 = vmatprep.subr.bf16.mxu0 %v1179_v5  ;;  %v1201_v23 = vld [vmem:[#allocation2 + $0xb0] ss:$20 sps:$4 sm:$0xff]   ;;  %v1202_v24 = vld [vmem:[#allocation2 + $0xd8] ss:$20 sps:$4 sm:$0xff]   ;;  %v1203_v25 = vld [vmem:[#allocation2 + $0x100] ss:$20 sps:$4 sm:$0xff]  }
  0x2f   :  { %v1204_v26 = vld [vmem:[#allocation2 + $0x128] ss:$20 sps:$4 sm:$0xff]   ;;  %v1205_v27 = vld [vmem:[#allocation2 + $0xc] ss:$20 sps:$4 sm:$0xff]   ;;  %v1210_v30 = vld [vmem:[#allocation2 + $0x30] ss:$20 sps:$4 sm:$0xff]  }
  0x30   :  { %v1207_v28 = vld [vmem:[#allocation2 + $0x8] ss:$20 sps:$4 sm:$0xff]   ;;  %355 = vmatprep.subr.bf16.mxu1 %v1205_v27  ;;  %v1213_v32 = vld [vmem:[#allocation2 + $0x58] ss:$20 sps:$4 sm:$0xff]   ;;  %v1216_v34 = vld [vmem:[#allocation2 + $0x80] ss:$20 sps:$4 sm:$0xff]  }
  0x31   :  { %319 = vmatpush1.bf16.msra.mxu0 %v1181_v6  ;;  %v1208_v29 = vld [vmem:[#allocation2 + $0x34] ss:$20 sps:$4 sm:$0xff]   ;;  %356 = vmatpush1.bf16.msra.mxu1 %v1207_v28  ;;  %v1211_v31 = vld [vmem:[#allocation2 + $0x5c] ss:$20 sps:$4 sm:$0xff]   ;;  %v1214_v33 = vld [vmem:[#allocation2 + $0x84] ss:$20 sps:$4 sm:$0xff]  }
  0x32   :  { %320 = vmatprep.subr.bf16.mxu0 %v1182_v7  ;;  %357 = vmatprep.subr.bf16.mxu1 %v1208_v29  ;;  %v1217_v35 = vld [vmem:[#allocation2 + $0xac] ss:$20 sps:$4 sm:$0xff]   ;;  %v1219_v36 = vld [vmem:[#allocation2 + $0xa8] ss:$20 sps:$4 sm:$0xff]   ;;  %v1222_v38 = vld [vmem:[#allocation2 + $0xd0] ss:$20 sps:$4 sm:$0xff]  }
  0x33   :  { %v1220_v37 = vld [vmem:[#allocation2 + $0xd4] ss:$20 sps:$4 sm:$0xff]   ;;  %v1223_v39 = vld [vmem:[#allocation2 + $0xfc] ss:$20 sps:$4 sm:$0xff]   ;;  %v1225_v40 = vld [vmem:[#allocation2 + $0xf8] ss:$20 sps:$4 sm:$0xff]  }
  0x34   :  { %v1226_v41 = vld [vmem:[#allocation2 + $0x124] ss:$20 sps:$4 sm:$0xff]   ;;  %v1228_v42 = vld [vmem:[#allocation2 + $0x120] ss:$20 sps:$4 sm:$0xff]   ;;  %v438_v49 = vsub.s32 0, %v1430_v48  ;;  %v1230_v58 = vld [vmem:[%s1555_s4 + $0x8] sm:$0xff]  }
  0x35   :  { %321 = vmatpush1.bf16.msra.mxu0 %v1184_v8  ;;  %358 = vmatpush1.bf16.msra.mxu1 %v1210_v30  ;;  %v1436_v50 = vld [vmem:[%s1557_s6] sm:$0xff]  ;;  %v458_v59 = vsub.s32 2, %v1430_v48  ;;  %v1231_v61 = vld [vmem:[%s1555_s4 + $0x10] sm:$0xff]   ;;  %v451_v1 = vsub.s32 1, %v1430_v48  ;;  %v479_v4 = vsub.s32 5, %v1430_v48  ;;  %v472_v5 = vsub.s32 4, %v1430_v48 }
  0x36   :  { %322 = vmatprep.subr.bf16.mxu0 %v1185_v9  ;;  %359 = vmatprep.subr.bf16.mxu1 %v1211_v31  ;;  %v439_v51 = vrot.slane %v1436_v50, %v438_v49  ;;  %v1229_v57 = vld [vmem:[%s1555_s4] sm:$0xff]   ;;  %v1232_v6 = vld [vmem:[%s1555_s4 + $0x18] sm:$0xff]   ;;  %v493_v9 = vsub.s32 7, %v1430_v48  ;;  %v500_v30 = vld [vmem:[%s1553_s2 + $0x10] sm:$0xff]  ;;  %vm602_vm1 = vcmask 1041409   ;;  %vm604_vm2 = vcmask 1042434  }
  0x37   :  { %v1253_v27 = vld [vmem:[#allocation4 + $0x60] ss:$12 sps:$4 sm:$0xff]   ;;  %v1259_v28 = vld [vmem:[#allocation4 + $0x7c] ss:$12 sps:$4 sm:$0xff]   ;;  %v1257_v29 = vld [vmem:[#allocation4 + $0x78] ss:$12 sps:$4 sm:$0xff]  }
  0x38   :  { %v498_v31 = vld [vmem:[%s1553_s2] sm:$0xff]  ;;  %vm606_vm3 = vcmask 1043459   ;;  %vm608_vm4 = vcmask 1044484   ;;  %vm610_vm5 = vcmask 1045509   ;;  %vm612_vm6 = vcmask 1046534  }
  0x39   :  { %323 = vmatpush1.bf16.msra.mxu0 %v1187_v10  ;;  %360 = vmatpush1.bf16.msra.mxu1 %v1213_v32  ;;  %v486_v10 = vsub.s32 6, %v1430_v48  ;;  %vm614_vm7 = vcmask 1047559  }
  0x3a   :  { %324 = vmatprep.subr.bf16.mxu0 %v1188_v11  ;;  %361 = vmatprep.subr.bf16.mxu1 %v1214_v33  ;;  %v1233_v11 = vld [vmem:[%s1555_s4 + $0x20] sm:$0xff]  }
  0x3d   :  { %325 = vmatpush1.bf16.msra.mxu0 %v1190_v12  ;;  %362 = vmatpush1.bf16.msra.mxu1 %v1216_v34 }
  0x3e   :  { %326 = vmatprep.subr.bf16.mxu0 %v1191_v13  ;;  %363 = vmatprep.subr.bf16.mxu1 %v1217_v35 }
  0x41   :  { %327 = vmatpush1.bf16.msra.mxu0 %v1193_v14  ;;  %364 = vmatpush1.bf16.msra.mxu1 %v1219_v36  ;;  %v1234_v14 = vld [vmem:[%s1555_s4 + $0x28] sm:$0xff]   ;;  %v501_v36 = vld [vmem:[%s1553_s2 + $0x18] sm:$0xff] }
  0x42   :  { %328 = vmatprep.subr.bf16.mxu0 %v1194_v15  ;;  %365 = vmatprep.subr.bf16.mxu1 %v1220_v37  ;;  %v1235_v15 = vld [vmem:[%s1555_s4 + $0x30] sm:$0xff]   ;;  %v499_v37 = vld [vmem:[%s1553_s2 + $0x8] sm:$0xff] }
  0x45   :  { %329 = vmatpush1.bf16.msra.mxu0 %v1196_v16  ;;  %366 = vmatpush1.bf16.msra.mxu1 %v1222_v38  ;;  %v1236_v16 = vld [vmem:[%s1555_s4 + $0x38] sm:$0xff]  }
  0x46   :  { %1104 = vmatprep.subr.bf16.mxu0 %v1336_v19  ;;  %367 = vmatprep.subr.bf16.mxu1 %v1223_v39 }
  0x48   :  { %347 = vmatmul.mubr.bf16.vlgmr.msra.gmra.mrb[0].mxu0 %v1407_v17 }
  0x49   :  { %1105 = vmatpush3.bf16.msra.mxu0 %v1197_v18  ;;  %1120 = vmatprep.mubr.msk.bf16.mxu0 %vm1337_vm0, %v1336_v19  ;;  %v1239_v18 = vld [vmem:[#allocation4 + $0x4] ss:$12 sps:$4 sm:$0xff]  }
  0x4a   :  { %1106 = vmatprep.subr.bf16.mxu0 %v1336_v19  ;;  %368 = vmatpush1.bf16.msra.mxu1 %v1225_v40 }
  0x4b   :  { %369 = vmatprep.subr.bf16.mxu1 %v1226_v41 }
  0x4d   :  { %1107 = vmatpush3.bf16.msra.mxu0 %v1198_v20  ;;  %v1243_v20 = vld [vmem:[#allocation4 + $0x1c] ss:$12 sps:$4 sm:$0xff]  }
  0x4e   :  { %1108 = vmatprep.subr.bf16.mxu0 %v1336_v19  ;;  %370 = vmatpush1.bf16.msra.mxu1 %v1228_v42 }
  0x4f   :  { %1124 = vmatprep.subr.bf16.mxu1 %v1336_v19 }
  0x51   :  { %1109 = vmatpush3.bf16.msra.mxu0 %v1199_v21  ;;  %388 = vmatmul.mubr.bf16.vlgmr.msra.gmra.mrb[0].mxu1 %v1407_v17  ;;  %v1241_v21 = vld [vmem:[#allocation4 + $0x18] ss:$12 sps:$4 sm:$0xff]  }
  0x52   :  { %1110 = vmatprep.subr.bf16.mxu0 %v1336_v19  ;;  %1140 = vmatprep.mubr.msk.bf16.mxu1 %vm1337_vm0, %v1336_v19 }
  0x53   :  { %1125 = vmatpush3.bf16.msra.mxu1 %v1229_v57 }
  0x54   :  { %1126 = vmatprep.subr.bf16.mxu1 %v1336_v19 }
  0x55   :  { %1111 = vmatpush3.bf16.msra.mxu0 %v1200_v22  ;;  %v1247_v22 = vld [vmem:[#allocation4 + $0x34] ss:$12 sps:$4 sm:$0xff]  }
  0x56   :  { %1112 = vmatprep.subr.bf16.mxu0 %v1336_v19 }
  0x57   :  { %1127 = vmatpush3.bf16.msra.mxu1 %v1230_v58 }
  0x58   :  { %1128 = vmatprep.subr.bf16.mxu1 %v1336_v19 }
  0x59   :  { %1113 = vmatpush3.bf16.msra.mxu0 %v1201_v23  ;;  %v1245_v23 = vld [vmem:[#allocation4 + $0x30] ss:$12 sps:$4 sm:$0xff]  }
  0x5a   :  { %1114 = vmatprep.subr.bf16.mxu0 %v1336_v19 }
  0x5b   :  { %1129 = vmatpush3.bf16.msra.mxu1 %v1231_v61 }
  0x5c   :  { %1130 = vmatprep.subr.bf16.mxu1 %v1336_v19 }
  0x5d   :  { %1115 = vmatpush3.bf16.msra.mxu0 %v1202_v24  ;;  %v1251_v24 = vld [vmem:[#allocation4 + $0x4c] ss:$12 sps:$4 sm:$0xff]  }
  0x5e   :  { %1116 = vmatprep.subr.bf16.mxu0 %v1336_v19 }
  0x5f   :  { %1131 = vmatpush3.bf16.msra.mxu1 %v1232_v6 }
  0x60   :  { %1132 = vmatprep.subr.bf16.mxu1 %v1336_v19 }
  0x61   :  { %1117 = vmatpush3.bf16.msra.mxu0 %v1203_v25  ;;  %v1249_v25 = vld [vmem:[#allocation4 + $0x48] ss:$12 sps:$4 sm:$0xff]  }
  0x62   :  { %1118 = vmatprep.subr.bf16.mxu0 %v1336_v19 }
  0x63   :  { %1133 = vmatpush3.bf16.msra.mxu1 %v1233_v11 }
  0x64   :  { %1134 = vmatprep.subr.bf16.mxu1 %v1336_v19 }
  0x65   :  { %1119 = vmatpush3.bf16.msra.mxu0 %v1204_v26  ;;  %v1255_v26 = vld [vmem:[#allocation4 + $0x64] ss:$12 sps:$4 sm:$0xff]  }
  0x66   :  { %874 = vmatprep.subr.bf16.mxu0 %v1239_v18 }
  0x67   :  { %1135 = vmatpush3.bf16.msra.mxu1 %v1234_v14 }
  0x68   :  { %1121 = vmatmul.mubr.bf16.vlgmr.msra.gmra.mrb[4].mxu0 %v1407_v17  ;;  %1136 = vmatprep.subr.bf16.mxu1 %v1336_v19  ;;  %v1237_v17 = vld [vmem:[#allocation4] ss:$12 sps:$4 sm:$0xff]  }
  0x69   :  { %906 = vmatprep.mubr.bf16.mxu0 %v1335_v0  ;;  %v465_v0 = vsub.s32 3, %v1430_v48  ;;  %875 = vmatpush1.bf16.msra.mxu0 %v1237_v17 }
  0x6a   :  { %876 = vmatprep.subr.bf16.mxu0 %v1243_v20 }
  0x6b   :  { %1137 = vmatpush3.bf16.msra.mxu1 %v1235_v15 }
  0x6c   :  { %1138 = vmatprep.subr.bf16.mxu1 %v1336_v19 }
  0x6d   :  { %877 = vmatpush1.bf16.msra.mxu0 %v1241_v21 }
  0x6e   :  { %878 = vmatprep.subr.bf16.mxu0 %v1247_v22 }
  0x6f   :  { %1139 = vmatpush3.bf16.msra.mxu1 %v1236_v16 }
  0x70   :  { %1144 = vmatprep.subr.bf16.mxu1 %v1336_v19 }
  0x71   :  { %879 = vmatpush1.bf16.msra.mxu0 %v1245_v23 }
  0x72   :  { %880 = vmatprep.subr.bf16.mxu0 %v1251_v24 }
  0x75   :  { %881 = vmatpush1.bf16.msra.mxu0 %v1249_v25 }
  0x76   :  { %882 = vmatprep.subr.bf16.mxu0 %v1255_v26 }
  0x79   :  { %883 = vmatpush1.bf16.msra.mxu0 %v1253_v27  ;;  %v987_v27 = vrot.slane %v1436_v50, %v479_v4 }
  0x7a   :  { %884 = vmatprep.subr.bf16.mxu0 %v1259_v28 }
  0x7d   :  { %885 = vmatpush1.bf16.msra.mxu0 %v1257_v29 }
 0x11b   :  { %v1426_v43 = vpop.f32.mrb[0].mxu0 }
 0x11c   :  { %v1428_v44 = vpop.f32.mrb[1].mxu0 }
 0x11d   :  { %v352_v45 = vpop.f32.mrb[2].mxu0 }
 0x11e   :  { %v353_v46 = vpop.f32.mrb[3].mxu0 }
 0x124   :  { %v1512_v26 = vpop.f32.mrb[0].mxu1 }
 0x13b   :  { %v430_v52 = vpop.f32.mrb[4].mxu0 }
 0x13c   :  { %v440_v53 = vadd.f32 %v439_v51, %v430_v52  ;;  %v1122_v54 = vpop.f32.mrb[5].mxu0 }
 0x13d   :  { %v433_v55 = vpop.f32.mrb[6].mxu0  ;;  %v503_v54 = vld [vmem:[%s1553_s2 + $0x28] sm:$0xff] }
 0x13e   :  { %1269 = vtanh.f32 %v440_v53  ;;  %v1123_v56 = vpop.f32.mrb[7].mxu0  ;;  %v502_v55 = vld [vmem:[%s1553_s2 + $0x20] sm:$0xff] }
 0x148   :  { %v1270_v60 = vpop.eup %1269 }
 0x149   :  { %v459_v62 = vrot.slane %v1270_v60, %v458_v59  ;;  %v445_v63 = vrot.slane %v1270_v60, %v438_v49  ;;  %v466_v2 = vrot.slane %v1270_v60, %v465_v0  ;;  %v452_v3 = vrot.slane %v1270_v60, %v451_v1 }
 0x14a   :  { %v480_v7 = vrot.slane %v1270_v60, %v479_v4  ;;  %v473_v8 = vrot.slane %v1270_v60, %v472_v5  ;;  %v494_v12 = vrot.slane %v1270_v60, %v493_v9  ;;  %v487_v13 = vrot.slane %v1270_v60, %v486_v10  ;;  %v505_v9 = vld [vmem:[%s1553_s2 + $0x38] sm:$0xff]  ;;  %v504_v10 = vld [vmem:[%s1553_s2 + $0x30] sm:$0xff] }
 0x14b   :  { %461 = vbcast.lane.b32.xlu1 %v459_v62, 256  ;;  %447 = vbcast.lane.b32.xlu0 %v445_v63, 256 }
 0x14f   :  { %468 = vbcast.lane.b32.xlu1 %v466_v2, 256  ;;  %454 = vbcast.lane.b32.xlu0 %v452_v3, 256 }
 0x153   :  { %482 = vbcast.lane.b32.xlu1 %v480_v7, 256  ;;  %475 = vbcast.lane.b32.xlu0 %v473_v8, 256 }
 0x157   :  { %496 = vbcast.lane.b32.xlu1 %v494_v12, 256  ;;  %489 = vbcast.lane.b32.xlu0 %v487_v13, 256 }
 0x1bd   :  { %v462_v32 = vpop.permute.xlu1 %461  ;;  %v448_v33 = vpop.permute.xlu0 %447 }
 0x1be   :  { %v508_v34 = vmul.f32 %v500_v30, %v462_v32  ;;  %v506_v35 = vmul.f32 %v498_v31, %v448_v33  ;;  %v391_v32 = vpop.f32.mrb[1].mxu1 }
 0x1c0   :  { %v526_v38 = vrot.slane %v508_v34, 4  ;;  %v514_v39 = vrot.slane %v506_v35, 4 }
 0x1c1   :  { %v469_v40 = vpop.permute.xlu1 %468  ;;  %v455_v41 = vpop.permute.xlu0 %454 }
 0x1c2   :  { %v527_v42 = vadd.f32 %v526_v38, %v508_v34  ;;  %v515_v45 = vadd.f32 %v514_v39, %v506_v35  ;;  %v509_v46 = vmul.f32 %v501_v36, %v469_v40  ;;  %v507_v47 = vmul.f32 %v499_v37, %v455_v41  ;;  %v393_v37 = vpop.f32.mrb[2].mxu1 }
 0x1c4   :  { %v528_v49 = vrot.slane %v527_v42, 2  ;;  %v516_v51 = vrot.slane %v515_v45, 2  ;;  %v532_v52 = vrot.slane %v509_v46, 4  ;;  %v520_v53 = vrot.slane %v507_v47, 4 }
 0x1c5   :  { %v483_v56 = vpop.permute.xlu1 %482  ;;  %v476_v57 = vpop.permute.xlu0 %475 }
 0x1c6   :  { %v529_v58 = vadd.f32 %v528_v49, %v527_v42  ;;  %v517_v60 = vadd.f32 %v516_v51, %v515_v45  ;;  %v533_v61 = vadd.f32 %v532_v52, %v509_v46  ;;  %v521_v62 = vadd.f32 %v520_v53, %v507_v47  ;;  %v394_v42 = vpop.f32.mrb[3].mxu1 }
 0x1c7   :  { %v511_v63 = vmul.f32 %v503_v54, %v483_v56  ;;  %v510_v2 = vmul.f32 %v502_v55, %v476_v57  ;;  %v1517_v47 = vadd.f32 %v987_v27, %v391_v32  ;;  %v1252_v27 = vld [vmem:[#allocation4 + $0x50] ss:$12 sps:$4 sm:$0xff]   ;;  %v1264_v32 = vld [vmem:[#allocation4 + $0x98] ss:$12 sps:$4 sm:$0xff]  }
 0x1c8   :  { %v530_v3 = vrot.slane %v529_v58, 1  ;;  %v518_v6 = vrot.slane %v517_v60, 1  ;;  %v534_v7 = vrot.slane %v533_v61, 2  ;;  %v522_v8 = vrot.slane %v521_v62, 2 }
 0x1c9   :  { %v544_v11 = vrot.slane %v511_v63, 4  ;;  %v538_v12 = vrot.slane %v510_v2, 4  ;;  %v497_v13 = vpop.permute.xlu1 %496  ;;  %v490_v14 = vpop.permute.xlu0 %489 }
 0x1ca   :  { %v531_v15 = vadd.f32 %v530_v3, %v529_v58  ;;  %v519_v16 = vadd.f32 %v518_v6, %v517_v60  ;;  %v535_v17 = vadd.f32 %v534_v7, %v533_v61  ;;  %v523_v18 = vadd.f32 %v522_v8, %v521_v62 }
 0x1cb   :  { %v545_v20 = vadd.f32 %v544_v11, %v511_v63  ;;  %v539_v21 = vadd.f32 %v538_v12, %v510_v2  ;;  %v513_v22 = vmul.f32 %v505_v9, %v497_v13  ;;  %v512_v23 = vmul.f32 %v504_v10, %v490_v14 }
 0x1cc   :  { %v536_v24 = vrot.slane %v535_v17, 1  ;;  %v524_v25 = vrot.slane %v523_v18, 1  ;;  %v564_v33 = vpack.c.bf16 %v531_v15, %v531_v15  ;;  %v562_v34 = vpack.c.bf16 %v519_v16, %v519_v16 }
 0x1cd   :  { %v546_v28 = vrot.slane %v545_v20, 2  ;;  %v540_v29 = vrot.slane %v539_v21, 2  ;;  %v556_v30 = vrot.slane %v513_v22, 4  ;;  %v550_v31 = vrot.slane %v512_v23, 4 }
 0x1ce   :  { %v537_v35 = vadd.f32 %v536_v24, %v535_v17  ;;  %v525_v36 = vadd.f32 %v524_v25, %v523_v18  ;;  %v596_v53 = vunpack.c.l.b16 %v564_v33  ;;  %v594_v54 = vunpack.c.l.b16 %v562_v34  ;;  %v1244_v24 = vld [vmem:[#allocation4 + $0x20] ss:$12 sps:$4 sm:$0xff]   ;;  %v1248_v25 = vld [vmem:[#allocation4 + $0x38] ss:$12 sps:$4 sm:$0xff]   ;;  %v1265_v34 = vld [vmem:[#allocation4 + $0xa8] ss:$12 sps:$4 sm:$0xff]  }
 0x1cf   :  { %v547_v38 = vadd.f32 %v546_v28, %v545_v20  ;;  %v541_v39 = vadd.f32 %v540_v29, %v539_v21  ;;  %v557_v40 = vadd.f32 %v556_v30, %v513_v22  ;;  %v551_v41 = vadd.f32 %v550_v31, %v512_v23  ;;  %v1240_v22 = vld [vmem:[#allocation4 + $0x8] ss:$12 sps:$4 sm:$0xff]   ;;  %v1260_v29 = vld [vmem:[#allocation4 + $0x80] ss:$12 sps:$4 sm:$0xff]   ;;  %v1261_v31 = vld [vmem:[#allocation4 + $0x90] ss:$12 sps:$4 sm:$0xff]  }
 0x1d0   :  { %v565_v45 = vpack.c.bf16 %v537_v35, %v537_v35  ;;  %v563_v46 = vpack.c.bf16 %v525_v36, %v525_v36  ;;  %v1256_v28 = vld [vmem:[#allocation4 + $0x68] ss:$12 sps:$4 sm:$0xff]   ;;  %v1267_v33 = vld [vmem:[#allocation4 + $0xac] ss:$12 sps:$4 sm:$0xff]   ;;  %v1268_v35 = vld [vmem:[#allocation4 + $0xb0] ss:$12 sps:$4 sm:$0xff]   ;;  %v710_v36 = vrot.slane %v1436_v50, %v451_v1 }
 0x1d1   :  { %v548_v4 = vrot.slane %v547_v38, 1  ;;  %v542_v49 = vrot.slane %v541_v39, 1  ;;  %v558_v51 = vrot.slane %v557_v40, 2  ;;  %v552_v52 = vrot.slane %v551_v41, 2  ;;  %v1263_v30 = vld [vmem:[#allocation4 + $0x94] ss:$12 sps:$4 sm:$0xff]  }
 0x1d2   :  { %v595_v55 = vunpack.c.l.b16 %v563_v46  ;;  %v597_v61 = vunpack.c.l.b16 %v565_v45  ;;  %886 = vmatprep.subr.bf16.mxu0 %v1263_v30 }
 0x1d3   :  { %v549_v56 = vadd.f32 %v548_v4, %v547_v38  ;;  %v543_v57 = vadd.f32 %v542_v49, %v541_v39  ;;  %v559_v58 = vadd.f32 %v558_v51, %v557_v40  ;;  %v553_v60 = vadd.f32 %v552_v52, %v551_v41  ;;  %887 = vmatpush1.bf16.msra.mxu0 %v1261_v31 }
 0x1d4   :  { %v603_v62 = vsel %vm602_vm1, %v595_v55, %v594_v54  ;;  %888 = vmatprep.subr.bf16.mxu0 %v1267_v33 }
 0x1d5   :  { %v605_v63 = vsel %vm604_vm2, %v596_v53, %v603_v62  ;;  %v567_v2 = vpack.c.bf16 %v549_v56, %v549_v56  ;;  %v566_v3 = vpack.c.bf16 %v543_v57, %v543_v57  ;;  %v560_v6 = vrot.slane %v559_v58, 1 }
 0x1d6   :  { %v554_v7 = vrot.slane %v553_v60, 1  ;;  %v607_v8 = vsel %vm606_vm3, %v597_v61, %v605_v63  ;;  %v971_v53 = vrot.slane %v1436_v50, %v465_v0 }
 0x1d7   :  { %v598_v9 = vunpack.c.l.b16 %v566_v3  ;;  %v561_v10 = vadd.f32 %v560_v6, %v559_v58  ;;  %v599_v12 = vunpack.c.l.b16 %v567_v2  ;;  %889 = vmatpush1.bf16.msra.mxu0 %v1265_v34 }
 0x1d8   :  { %v555_v11 = vadd.f32 %v554_v7, %v553_v60 }
 0x1d9   :  { %v569_v13 = vpack.c.bf16 %v561_v10, %v561_v10  ;;  %v609_v14 = vsel %vm608_vm4, %v598_v9, %v607_v8  ;;  %v56_v9 = vld [vmem:[%s1552_s1] sm:$0xff] }
 0x1da   :  { %v568_v15 = vpack.c.bf16 %v555_v11, %v555_v11  ;;  %v611_v18 = vsel %vm610_vm5, %v599_v12, %v609_v14 }
 0x1db   :  { %v601_v16 = vunpack.c.l.b16 %v569_v13 }
 0x1dc   :  { %v600_v17 = vunpack.c.l.b16 %v568_v15 }
 0x1de   :  { %v613_v20 = vsel %vm612_vm6, %v600_v17, %v611_v18 }
 0x1df   :  { %v615_v21 = vsel %vm614_vm7, %v601_v16, %v613_v20 }
 0x1e0   :  { %v616_v23 = vpack.c.b16 %v615_v21, %v615_v21 }
 0x1e2   :  { %1141 = vmatmul.mubr.bf16.vlgmr.msra.gmra.mrb[4].mxu1 %v616_v23 }
 0x1e3   :  { %1145 = vmatpush3.bf16.msra.mxu1 %v1240_v22  ;;  %1160 = vmatprep.mubr.msk.bf16.mxu1 %vm1337_vm0, %v1336_v19 }
 0x1e4   :  { %1146 = vmatprep.subr.bf16.mxu1 %v1336_v19 }
 0x1e7   :  { %1147 = vmatpush3.bf16.msra.mxu1 %v1244_v24 }
 0x1e8   :  { %1148 = vmatprep.subr.bf16.mxu1 %v1336_v19 }
 0x1eb   :  { %1149 = vmatpush3.bf16.msra.mxu1 %v1248_v25 }
 0x1ec   :  { %1150 = vmatprep.subr.bf16.mxu1 %v1336_v19 }
 0x1ef   :  { %1151 = vmatpush3.bf16.msra.mxu1 %v1252_v27 }
 0x1f0   :  { %1152 = vmatprep.subr.bf16.mxu1 %v1336_v19 }
 0x1f3   :  { %1153 = vmatpush3.bf16.msra.mxu1 %v1256_v28 }
 0x1f4   :  { %1154 = vmatprep.subr.bf16.mxu1 %v1336_v19 }
 0x1f7   :  { %1155 = vmatpush3.bf16.msra.mxu1 %v1260_v29 }
 0x1f8   :  { %1156 = vmatprep.subr.bf16.mxu1 %v1336_v19 }
 0x1fb   :  { %1157 = vmatpush3.bf16.msra.mxu1 %v1264_v32 }
 0x1fc   :  { %1158 = vmatprep.subr.bf16.mxu1 %v1336_v19  ;;  %v959_v19 = vrot.slane %v1436_v50, %v458_v59 }
 0x1ff   :  { %1159 = vmatpush3.bf16.msra.mxu1 %v1268_v35 }
 0x2b5   :  { %v700_v37 = vpop.f32.mrb[4].mxu1 }
 0x2b6   :  { %v706_v38 = vadd.f32 %v700_v37, %v1426_v43  ;;  %v1142_v39 = vpop.f32.mrb[5].mxu1 }
 0x2b7   :  { %v703_v40 = vpop.f32.mrb[6].mxu1 }
 0x2b8   :  { %v711_v41 = vadd.f32 %v710_v36, %v706_v38  ;;  %v1143_v42 = vpop.f32.mrb[7].mxu1 }
 0x2ba   :  { %v712_v45 = vmax.f32 %v711_v41, 0.0 }
 0x2bc   :  { %v713_v46 = vpack.c.bf16 %v712_v45, %v712_v45 }
 0x2be   :  { %907 = vmatmul.mubr.bf16.vlgmr.msra.gmra.mrb[8].mxu0 %v713_v46  ;;  %1161 = vmatmul.mubr.bf16.vlgmr.msra.gmra.mrb[8].mxu1 %v713_v46 }
 0x391   :  { %v908_v4 = vpop.f32.mrb[8].mxu0  ;;  %v949_v49 = vpop.f32.mrb[8].mxu1 }
 0x392   :  { %v955_v51 = vadd.f32 %v908_v4, %v1428_v44  ;;  %v910_v1 = vpop.f32.mrb[9].mxu0  ;;  %v1162_v52 = vpop.f32.mrb[9].mxu1 }
 0x393   :  { %v967_v43 = vadd.f32 %v910_v1, %v1512_v26  ;;  %v912_v54 = vpop.f32.mrb[10].mxu0  ;;  %v952_v55 = vpop.f32.mrb[10].mxu1  ;;  %v982_v26 = vrot.slane %v1436_v50, %v472_v5 }
 0x394   :  { %v960_v56 = vadd.f32 %v959_v19, %v955_v51  ;;  %v913_v57 = vpop.f32.mrb[11].mxu0  ;;  %v1163_v58 = vpop.f32.mrb[11].mxu1 }
 0x395   :  { %v972_v61 = vadd.f32 %v971_v53, %v967_v43  ;;  %v983_v3 = vadd.f32 %v982_v26, %v949_v49 }
 0x396   :  { %v1075_v60 = vmul.f32 -1.442695, %v960_v56 }
 0x397   :  { %v1076_v59 = vmul.f32 -1.442695, %v972_v61 }
 0x398   :  { %1271 = vpow2.f32 %v1075_v60 }
 0x399   :  { %1273 = vpow2.f32 %v1076_v59 }
 0x3a2   :  { %v1272_v62 = vpop.eup %1271 }
 0x3a3   :  { %v964_v44 = vadd.f32 1.0, %v1272_v62  ;;  %v1274_v63 = vpop.eup %1273 }
 0x3a4   :  { %v976_v2 = vadd.f32 1.0, %v1274_v63 }
 0x3a5   :  { %1275 = vrcp.f32 %v964_v44 }
 0x3a6   :  { %1277 = vrcp.f32 %v976_v2 }
 0x3af   :  { %v1276_v0 = vpop.eup %1275 }
 0x3b0   :  { %v989_v6 = vmul.f32 %v1276_v0, %v1517_v47  ;;  %v1278_v8 = vpop.eup %1277 }
 0x3b1   :  { %v992_v10 = vsub.f32 1.0, %v1278_v8  ;;  %v994_v13 = vmul.f32 %v1278_v8, %v56_v9 }
 0x3b2   :  { %v990_v7 = vadd.f32 %v989_v6, %v983_v3 }
 0x3b4   :  { %1279 = vtanh.f32 %v990_v7 }
 0x3be   :  { %v1280_v11 = vpop.eup %1279 }
 0x3bf   :  { %v993_v12 = vmul.f32 %v1280_v11, %v992_v10 }
 0x3c1   :  { %v995_v48 = vadd.f32 %v994_v13, %v993_v12 }
 0x3c3   :  { %996 = vst [vmem:[%s1558_s7] sm:$0xff] %v995_v48 }
 0x3c4   :  { %1001 = vsyncpa [#allocation3], 1 }
 0x3c5   :  { %1002 = vsyncpa [#allocation5], 1 }

</bundles_post_ra>
